<compile_context>
chip_gen: v5e
topology: v5e:2x2
jax: 0.10.0
libtpu: 0.0.40
codegen_flags: <defaults>
</compile_context>

<pallas_src>
import functools

import jax
import jax.numpy as jnp
from jax import lax
from jax.experimental import pallas as pl
from jax.experimental.pallas import tpu as pltpu


def _round_up(n, m):
    return ((n + m - 1) // m) * m


def _grid_sample_kernel(img_ref, grid_ref, out_ref, *, C, H, W, H_pad):
    # img_ref:  (1, C*H_pad, W)  whole (zero-row-padded) image for one batch
    # grid_ref: (1, 2, TQ)       x / y normalized coords for TQ output pixels
    # out_ref:  (1, C, TQ)
    TQ = out_ref.shape[-1]
    img = img_ref[0].astype(jnp.float32)              # (C*H_pad, W)
    g = grid_ref[0].astype(jnp.float32)               # (2, TQ)

    x = g[0:1, :]                                     # (1, TQ): W axis (grid[..., 0])
    y = g[1:2, :]                                     # (1, TQ): H axis (grid[..., 1])

    # align_corners=True unnormalization: [-1, 1] -> [0, dim-1]
    xf = (x + 1.0) * (0.5 * (W - 1))
    yf = (y + 1.0) * (0.5 * (H - 1))

    ix0f = jnp.floor(xf)
    iy0f = jnp.floor(yf)
    ix0 = ix0f.astype(jnp.int32)                      # (1, TQ)
    iy0 = iy0f.astype(jnp.int32)                      # (1, TQ)

    wx1 = xf - ix0f
    wx0 = 1.0 - wx1
    wy1 = yf - iy0f
    wy0 = 1.0 - wy1

    # ---- x interpolation (MXU): Mx[w, q] = wx0 if w == ix0[q], wx1 if
    # w == ix0[q]+1, else 0.  Out-of-range ix never matches the iota rows,
    # which implements padding_mode='zeros' with no explicit validity mask.
    dx = lax.broadcasted_iota(jnp.int32, (W, TQ), 0) - ix0        # (W, TQ)
    Mx = jnp.where(dx == 0, wx0, 0.0) + jnp.where(dx == 1, wx1, 0.0)

    A = jnp.dot(img, Mx, preferred_element_type=jnp.float32)      # (C*H_pad, TQ)

    # ---- y interpolation (VPU multiply + sublane reduce over H_pad).
    # Rows in [H, H_pad) of the padded image are zero, so a match there
    # contributes nothing (== zeros padding).
    dy = lax.broadcasted_iota(jnp.int32, (H_pad, TQ), 0) - iy0    # (H_pad, TQ)
    My = jnp.where(dy == 0, wy0, 0.0) + jnp.where(dy == 1, wy1, 0.0)

    out = jnp.sum(A.reshape(C, H_pad, TQ) * My[None, :, :], axis=1)  # (C, TQ)
    out_ref[0] = out.astype(out_ref.dtype)


def spatial_transformer_forward(img, matrix, mode='bilinear',
                                padding_mode='zeros', align_corners=True):
    """img: (B, C, H, W), matrix (flow_grid): (B, H, W, 2) in [-1, 1]."""
    # TODO(synk): only mode='bilinear', padding_mode='zeros',
    # align_corners=True (the module defaults) and 2-D inputs are implemented.
    assert mode == 'bilinear' and padding_mode == 'zeros' and align_corners
    B, C, H, W = img.shape
    assert matrix.shape == (B, H, W, 2), 'img and matrix should have the same shape'
    Q = H * W

    # Lane-dense, 128-aligned output-pixel axis; TQ <= 512 keeps the per-tile
    # one-hot matrices small enough for v7x's 64 MiB VMEM and 256-aligned for
    # the MXU. TQ always divides Q_pad since Q_pad is a multiple of 128.
    Q_pad = _round_up(Q, 128)
    if Q_pad % 512 == 0:
        TQ = 512
    elif Q_pad % 256 == 0:
        TQ = 256
    else:
        TQ = 128
    num_q_tiles = Q_pad // TQ

    # Pad each channel to a multiple of 8 rows so the in-kernel
    # (C*H_pad, TQ) -> (C, H_pad, TQ) reshape stays sublane-tile aligned.
    H_pad = _round_up(H, 8)

    img_rows = jnp.pad(img, ((0, 0), (0, 0), (0, H_pad - H), (0, 0)))
    img_rows = img_rows.reshape(B, C * H_pad, W)

    grid_cl = jnp.transpose(matrix.reshape(B, Q, 2), (0, 2, 1))   # (B, 2, Q)
    grid_cl = jnp.pad(grid_cl, ((0, 0), (0, 0), (0, Q_pad - Q)))

    kernel = functools.partial(_grid_sample_kernel, C=C, H=H, W=W, H_pad=H_pad)

    # Explicit VMEM budget: double-buffered blocks + f32 in-kernel temporaries
    # (Mx, A, My, weight vectors) with slack; floored at the usual scoped
    # default and capped to stay inside v7x's 64 MiB physical VMEM.
    in_item = jnp.dtype(img.dtype).itemsize
    g_item = jnp.dtype(matrix.dtype).itemsize
    vmem = (2 * C * H_pad * W * in_item              # img block (double-buffered)
            + 2 * 2 * TQ * g_item                    # grid block
            + 2 * C * TQ * in_item                   # out block
            + 3 * 4 * (C * H_pad + W + H_pad + 16) * TQ   # f32 temporaries
            + (2 << 20))                             # slack
    vmem = int(min(max(vmem, 16 * 1024 * 1024), 60 * 1024 * 1024))

    out = pl.pallas_call(
        kernel,
        out_shape=jax.ShapeDtypeStruct((B, C, Q_pad), img.dtype),
        grid_spec=pltpu.PrefetchScalarGridSpec(
            num_scalar_prefetch=0,
            grid=(B, num_q_tiles),                   # batch outer, q-tile inner
            in_specs=[
                # image block index is constant over the q-tile axis ->
                # the (C*H_pad, W) image is DMA'd from HBM once per batch.
                pl.BlockSpec((1, C * H_pad, W), lambda b, qt: (b, 0, 0)),
                pl.BlockSpec((1, 2, TQ), lambda b, qt: (b, 0, qt)),
            ],
            out_specs=pl.BlockSpec((1, C, TQ), lambda b, qt: (b, 0, qt)),
        ),
        compiler_params=pltpu.CompilerParams(
            dimension_semantics=("parallel", "parallel"),
            vmem_limit_bytes=vmem),
    )(img_rows, grid_cl)

    deformed_img = out[:, :, :Q].reshape(B, C, H, W)
    return deformed_img, {'flow_grid': matrix}


def _reference_grid_sample(img, grid):
    """Pure-JAX reference of F.grid_sample (bilinear, zeros, align_corners=True)."""
    B, C, H, W = img.shape
    x = (grid[..., 0] + 1.0) * 0.5 * (W - 1)   # (B, H, W)
    y = (grid[..., 1] + 1.0) * 0.5 * (H - 1)
    ix0 = jnp.floor(x).astype(jnp.int32)
    iy0 = jnp.floor(y).astype(jnp.int32)
    ix1 = ix0 + 1
    iy1 = iy0 + 1
    wx1 = x - ix0
    wx0 = 1.0 - wx1
    wy1 = y - iy0
    wy0 = 1.0 - wy1

    def gather_one(imgb, iy, ix):
        valid = ((ix >= 0) & (ix < W) & (iy >= 0) & (iy < H)).astype(imgb.dtype)
        ixc = jnp.clip(ix, 0, W - 1)
        iyc = jnp.clip(iy, 0, H - 1)
        return imgb[:, iyc, ixc] * valid[None]   # (C, H, W)

    gather = jax.vmap(gather_one)
    out = (gather(img, iy0, ix0) * (wy0 * wx0)[:, None]
           + gather(img, iy0, ix1) * (wy0 * wx1)[:, None]
           + gather(img, iy1, ix0) * (wy1 * wx0)[:, None]
           + gather(img, iy1, ix1) * (wy1 * wx1)[:, None])
    return out


if __name__ == "__main__":
    key = jax.random.PRNGKey(0)
    k_img, k_grid = jax.random.split(key)

    B, C, H, W = 2, 4, 16, 16
    img = jax.random.normal(k_img, (B, C, H, W), dtype=jnp.float32)
    # flow_grid in [-1, 1], shape (B, H, W, 2) as the module's forward expects
    matrix = jax.random.uniform(k_grid, (B, H, W, 2),
                                minval=-1.0, maxval=1.0, dtype=jnp.float32)

    deformed, aux = spatial_transformer_forward(img, matrix)
    deformed = jax.block_until_ready(deformed)

    assert deformed.shape == (B, C, H, W)
    assert deformed.dtype == img.dtype
    assert aux['flow_grid'].shape == matrix.shape

    ref = _reference_grid_sample(img, matrix)
    assert jnp.allclose(deformed, ref, atol=1e-4, rtol=1e-4), \
        float(jnp.max(jnp.abs(deformed - ref)))

    print("KERNEL_OK")
</pallas_src>

<mosaic_0001>
module attributes {stable_mosaic.version = 11 : i64} {
  func.func @_grid_sample_kernel(%arg0: i32, %arg1: i32, %arg2: memref<1x64x16xf32, #tpu.memory_space<vmem>>, %arg3: memref<1x2x256xf32, #tpu.memory_space<vmem>>, %arg4: memref<1x4x256xf32, #tpu.memory_space<vmem>>) attributes {dimension_semantics = [#tpu.dimension_semantics<parallel>, #tpu.dimension_semantics<parallel>], iteration_bounds = array<i64: 2, 1>, scalar_prefetch = 0 : i64, scratch_operands = 0 : i64, tpu.core_type = #tpu.core_type<tc>, window_params = [{transform_indices = @transform_0, window_bounds = array<i64: 1, 64, 16>}, {transform_indices = @transform_1, window_bounds = array<i64: 1, 2, 256>}, {transform_indices = @transform_2, window_bounds = array<i64: 1, 4, 256>}]} {
    %c0 = arith.constant 0 : index
    %c0_0 = arith.constant 0 : index
    %c0_1 = arith.constant 0 : index
    %0 = vector.load %arg2[%c0, %c0_0, %c0_1] : memref<1x64x16xf32, #tpu.memory_space<vmem>>, vector<1x64x16xf32>
    %1 = vector.shape_cast %0 : vector<1x64x16xf32> to vector<64x16xf32>
    %c0_2 = arith.constant 0 : index
    %c0_3 = arith.constant 0 : index
    %c0_4 = arith.constant 0 : index
    %2 = vector.load %arg3[%c0_2, %c0_3, %c0_4] : memref<1x2x256xf32, #tpu.memory_space<vmem>>, vector<1x2x256xf32>
    %3 = vector.shape_cast %2 : vector<1x2x256xf32> to vector<2x256xf32>
    %4 = vector.extract_strided_slice %3 {offsets = [0, 0], sizes = [1, 256], strides = [1, 1]} : vector<2x256xf32> to vector<1x256xf32>
    %5 = vector.extract_strided_slice %3 {offsets = [1, 0], sizes = [1, 256], strides = [1, 1]} : vector<2x256xf32> to vector<1x256xf32>
    %cst = arith.constant 1.000000e+00 : f32
    %6 = vector.broadcast %cst : f32 to vector<1x256xf32>
    %7 = arith.addf %4, %6 : vector<1x256xf32>
    %cst_5 = arith.constant 7.500000e+00 : f32
    %8 = vector.broadcast %cst_5 : f32 to vector<1x256xf32>
    %9 = arith.mulf %7, %8 : vector<1x256xf32>
    %cst_6 = arith.constant 1.000000e+00 : f32
    %10 = vector.broadcast %cst_6 : f32 to vector<1x256xf32>
    %11 = arith.addf %5, %10 : vector<1x256xf32>
    %cst_7 = arith.constant 7.500000e+00 : f32
    %12 = vector.broadcast %cst_7 : f32 to vector<1x256xf32>
    %13 = arith.mulf %11, %12 : vector<1x256xf32>
    %14 = math.floor %9 : vector<1x256xf32>
    %15 = math.floor %13 : vector<1x256xf32>
    %16 = arith.fptosi %14 : vector<1x256xf32> to vector<1x256xi32>
    %17 = arith.fptosi %15 : vector<1x256xf32> to vector<1x256xi32>
    %18 = arith.subf %9, %14 : vector<1x256xf32>
    %cst_8 = arith.constant 1.000000e+00 : f32
    %19 = vector.broadcast %cst_8 : f32 to vector<1x256xf32>
    %20 = arith.subf %19, %18 : vector<1x256xf32>
    %21 = arith.subf %13, %15 : vector<1x256xf32>
    %cst_9 = arith.constant 1.000000e+00 : f32
    %22 = vector.broadcast %cst_9 : f32 to vector<1x256xf32>
    %23 = arith.subf %22, %21 : vector<1x256xf32>
    %24 = tpu.iota {dimensions = array<i32: 0>} : vector<16x256xi32>
    %25 = vector.broadcast %16 : vector<1x256xi32> to vector<16x256xi32>
    %26 = arith.subi %24, %25 : vector<16x256xi32>
    %c0_i32 = arith.constant 0 : i32
    %27 = vector.broadcast %c0_i32 : i32 to vector<16x256xi32>
    %28 = arith.cmpi eq, %26, %27 : vector<16x256xi32>
    %cst_10 = arith.constant 0.000000e+00 : f32
    %29 = vector.shape_cast %20 : vector<1x256xf32> to vector<1x256xf32>
    %30 = vector.broadcast %29 : vector<1x256xf32> to vector<16x256xf32>
    %31 = vector.broadcast %cst_10 : f32 to vector<16x256xf32>
    %32 = arith.select %28, %30, %31 : vector<16x256xi1>, vector<16x256xf32>
    %c1_i32 = arith.constant 1 : i32
    %33 = vector.broadcast %c1_i32 : i32 to vector<16x256xi32>
    %34 = arith.cmpi eq, %26, %33 : vector<16x256xi32>
    %cst_11 = arith.constant 0.000000e+00 : f32
    %35 = vector.shape_cast %18 : vector<1x256xf32> to vector<1x256xf32>
    %36 = vector.broadcast %35 : vector<1x256xf32> to vector<16x256xf32>
    %37 = vector.broadcast %cst_11 : f32 to vector<16x256xf32>
    %38 = arith.select %34, %36, %37 : vector<16x256xi1>, vector<16x256xf32>
    %39 = arith.addf %32, %38 : vector<16x256xf32>
    %cst_12 = arith.constant dense<0.000000e+00> : vector<64x256xf32>
    %40 = tpu.matmul %1, %39, %cst_12 {dimension_numbers = #tpu.dot_dimension_numbers<[1], [0], [0], [1], [0, 0, 1, 1], [], []>} : vector<64x16xf32>, vector<16x256xf32>, vector<64x256xf32> -> vector<64x256xf32>
    %41 = tpu.iota {dimensions = array<i32: 0>} : vector<16x256xi32>
    %42 = vector.broadcast %17 : vector<1x256xi32> to vector<16x256xi32>
    %43 = arith.subi %41, %42 : vector<16x256xi32>
    %c0_i32_13 = arith.constant 0 : i32
    %44 = vector.broadcast %c0_i32_13 : i32 to vector<16x256xi32>
    %45 = arith.cmpi eq, %43, %44 : vector<16x256xi32>
    %cst_14 = arith.constant 0.000000e+00 : f32
    %46 = vector.shape_cast %23 : vector<1x256xf32> to vector<1x256xf32>
    %47 = vector.broadcast %46 : vector<1x256xf32> to vector<16x256xf32>
    %48 = vector.broadcast %cst_14 : f32 to vector<16x256xf32>
    %49 = arith.select %45, %47, %48 : vector<16x256xi1>, vector<16x256xf32>
    %c1_i32_15 = arith.constant 1 : i32
    %50 = vector.broadcast %c1_i32_15 : i32 to vector<16x256xi32>
    %51 = arith.cmpi eq, %43, %50 : vector<16x256xi32>
    %cst_16 = arith.constant 0.000000e+00 : f32
    %52 = vector.shape_cast %21 : vector<1x256xf32> to vector<1x256xf32>
    %53 = vector.broadcast %52 : vector<1x256xf32> to vector<16x256xf32>
    %54 = vector.broadcast %cst_16 : f32 to vector<16x256xf32>
    %55 = arith.select %51, %53, %54 : vector<16x256xi1>, vector<16x256xf32>
    %56 = arith.addf %49, %55 : vector<16x256xf32>
    %57 = vector.shape_cast %40 : vector<64x256xf32> to vector<4x16x256xf32>
    %58 = vector.shape_cast %56 : vector<16x256xf32> to vector<1x16x256xf32>
    %59 = vector.broadcast %58 : vector<1x16x256xf32> to vector<4x16x256xf32>
    %60 = arith.mulf %57, %59 : vector<4x16x256xf32>
    %cst_17 = arith.constant dense<0.000000e+00> : vector<4x256xf32>
    %61 = vector.multi_reduction <add>, %60, %cst_17 [1] : vector<4x16x256xf32> to vector<4x256xf32>
    %c0_18 = arith.constant 0 : index
    %c0_19 = arith.constant 0 : index
    %c0_20 = arith.constant 0 : index
    %62 = vector.load %arg4[%c0_18, %c0_19, %c0_20] : memref<1x4x256xf32, #tpu.memory_space<vmem>>, vector<1x4x256xf32>
    %63 = vector.shape_cast %62 : vector<1x4x256xf32> to vector<4x256xf32>
    %64 = vector.shape_cast %61 : vector<4x256xf32> to vector<1x4x256xf32>
    tpu.vector_store %arg4[%c0_18, %c0_19, %c0_20], %64 {strides = array<i32>} : memref<1x4x256xf32, #tpu.memory_space<vmem>>, vector<1x4x256xf32>,
    return
  }
  func.func @transform_0(%arg0: i32, %arg1: i32) -> (i32, i32, i32) {
    %c0_i32 = arith.constant 0 : i32
    %c0_i32_0 = arith.constant 0 : i32
    %c0_i32_1 = arith.constant 0 : i32
    return %arg0, %c0_i32, %c0_i32_0 : i32, i32, i32
  }
  func.func @transform_1(%arg0: i32, %arg1: i32) -> (i32, i32, i32) {
    %c0_i32 = arith.constant 0 : i32
    %c0_i32_0 = arith.constant 0 : i32
    return %arg0, %c0_i32, %arg1 : i32, i32, i32
  }
  func.func @transform_2(%arg0: i32, %arg1: i32) -> (i32, i32, i32) {
    %c0_i32 = arith.constant 0 : i32
    %c0_i32_0 = arith.constant 0 : i32
    return %arg0, %c0_i32, %arg1 : i32, i32, i32
  }
}

</mosaic_0001>

<bundles_post_ra>
// kernel: tpu_custom_call.1
= control target key start
LH: loop header
LB: loop body
LE: loop exit
PB: predicated region body
PF: predicated region fallthrough
CT: control target
= control target key end

     0   :  { %7 = vsyncpa [#allocation3], 0  ;;  %s982_s0 = inlined_call_operand.vmem [shape: f32[2,64,16], index: 0, kind: input, shape index: {}]   ;;  %s983_s1 = inlined_call_operand.vmem [shape: f32[2,2,256], index: 1, kind: input, shape index: {}]   ;;  %s984_s2 = inlined_call_operand.hbm [shape: f32[2,4,256], index: 2, kind: output, shape index: {}]  }
   0x1   :  { %9 = vsyncpa [#allocation3 + $0x1], 0  ;;  %s803_s9 = smov 0   ;;  %s805_s10 = smov 0  }
   0x2   :  { %s807_s11 = smov 0   ;;  %s809_s12 = smov 0  }
   0x3   :  { %s811_s13 = smov 0   ;;  %s813_s14 = smov 0  }
   0x4 LB: > { %s613_s15 = sadd.s32 4294967295, %s786_s14   ;;  %s614_s16 = sadd.s32 4294967294, %s786_s14   ;;  %s786_s14 = sphi %s813_s14, %s15_s14   ;;  %s782_s13 = sphi %s811_s13, %s991_s13   ;;  %s778_s12 = sphi %s809_s12, %s990_s12   ;;  %s774_s11 = sphi %s807_s11, %s989_s11   ;;  %s770_s10 = sphi %s805_s10, %s988_s10   ;;  %s766_s9 = sphi %s803_s9, %s987_s9  }
   0x5   : > { %s27_s17 = sadd.s32 1, %s782_s13  ;;  %s90_s18 = sadd.s32 1, %s774_s11 }
   0x6   : > { %p29_p0 = scmp.ge.s32.totalorder %s27_s17, 2  ;;  %p100_p1 = scmp.ne.s32.totalorder %s774_s11, %s770_s10 }
   0x7   : > { %p101_p2 = scmp.eq.s32.totalorder %s613_s15, 1  ;;  %p106_p3 = scmp.ne.s32.totalorder %s770_s10, %s766_s9 }
   0x8   : > { %s993_s17 = smov (%p29_p0, %s27_s17), 0  ;;  %p107_p5 = scmp.eq.s32.totalorder %s614_s16, 1 }
   0x9   : > { %p843_p4 = por %p101_p2, %p100_p1  ;;  %s85_s20 = ssub.s32 %s782_s13, %s993_s17 }
   0xa   : > { %p617_p6 = scmp.ge.s32.totalorder %s786_s14, 1  ;;  %p88_p7 = scmp.eq.s32.totalorder %s85_s20, 0 }
   0xb   : > { %p850_p8 = por %p107_p5, %p106_p3  ;;  %p146_p9 = scmp.lt.s32.totalorder %s786_s14, 3 }
   0xc   : > { %s856_s22 = scalar_select %p88_p7, %s774_s11, %s90_s18  }
   0xd   : > { %p147_p10 = pnand %p617_p6, %p146_p9 }
   0xe   : > { %p177_p11 = scmp.lt.s32.totalorder (!%p147_p10), %s778_s12, 1  ;;  %s174_s4 = sand.u32 (!%p147_p10), 1, %s770_s10  }
   0xf   : > { %150 = sbr.rel (%p147_p10) target bundleno = 230 (0xe6), region = 28  ;;  %s937_s5 = sshll.u32 (!%p147_p10), %s174_s4, 3 }
  0x10   : > { %s646_s6 = sshll.u32 (!%p147_p10), %s778_s12, 3  ;;  %s507_s20 = scalar_lea.sflag (!%p147_p10), [#allocation3], %s174_s4 }
  0x11   : > { %s520_s15 = scalar_lea.hbm (!%p147_p10), %s984_s2, %s646_s6 }
  0x12   : > { %s524_s18 = sshll.u32 (!%p147_p10), %s520_s15, 4  ;;  %s525_s18 = int_to_ptr.hbm [resolvable:$true] %s524_s18 }
  0x14   : > { %s860_s23 = scalar_select %p177_p11, %s778_s12, 1  ;;  %v208_v1 = vlaneseq  ;;  %vm253_vm8 = vcmask 130048  }
  0x15   : > { %s176_s12 = scalar_lea.vmem [#allocation2], %s937_s5 }
  0x16   : > { %s645_s24 = sshll.u32 %s860_s23, 2  ;;  %v866_v4 = vshrl.u32 %v208_v1, 7  ;;  %s644_s28 = sshll.u32 %s860_s23, 6 }
  0x17   : > { %s190_s27 = scalar_lea.vmem %s983_s1, %s645_s24  ;;  %s892_s3 = scalar_lea.vmem %s982_s0, %s644_s28 }
  0x18   : > { %v201_v0 = vld [vmem:[%s190_s27] sm:$0xf]  ;;  %v873_v8 = vadd.s32 8, %v866_v4  ;;  %v194_v40 = vld [vmem:[%s892_s3 + $0x8] sm:$0xff]  ;;  %v195_v42 = vld [vmem:[%s892_s3 + $0x10] sm:$0xff]  ;;  %s522_s16 = sshll.u32 %s176_s12, 4  ;;  %s523_s16 = int_to_ptr.vmem [resolvable:$true] %s522_s16 }
  0x19   : > { %v202_v2 = vadd.f32 1.0, %v201_v0  ;;  %v193_v38 = vld [vmem:[%s892_s3] sm:$0xff]  ;;  %v198_v41 = vld [vmem:[%s892_s3 + $0x28] sm:$0xff]  ;;  %v199_v43 = vld [vmem:[%s892_s3 + $0x30] sm:$0xff]  ;;  %s722_s23 = sshra.s32 %s525_s18, 4  ;;  %s728_s27 = scalar_lea.hbm %s984_s2, 16  ;;  %s723_s23 = int_to_ptr.hbm [resolvable:$true] %s722_s23 }
  0x1a   : > { %v197_v39 = vld [vmem:[%s892_s3 + $0x20] sm:$0xff]  ;;  %v196_v44 = vld [vmem:[%s892_s3 + $0x18] sm:$0xff]  ;;  %s724_s24 = scalar_lea.hbm %s723_s23, 8  ;;  %p729_p1 = scmp.lt.s32.totalorder %s723_s23, %s984_s2 }
  0x1b   : > { %v203_v3 = vmul.f32 7.5, %v202_v2  ;;  %v200_v45 = vld [vmem:[%s892_s3 + $0x38] sm:$0xff]  ;;  %p725_p12 = scmp.ne.s32.totalorder %s723_s23, %s724_s24  ;;  %p730_p2 = scmp.lt.s32.totalorder %s728_s27, %s724_s24 }
  0x1d   : > { %v204_v5 = vfloor.f32 %v203_v3  ;;  %p726_p13 = pnand %p725_p12, %p843_p4  ;;  %p731_p3 = por %p730_p2, %p729_p1 }
  0x1f   : > { %v868_v6 = vcvt.f32.s32 %v204_v5  ;;  %v870_v7 = vsub.f32 %v203_v3, %v204_v5  ;;  %p727_p0 = pneg %p726_p13 }
  0x21   : > { %v876_v9 = vsub.f32 1.0, %v870_v7  ;;  %v211_v10 = vperm.slane %v868_v6, 0  ;;  %v239_v11 = vperm.slane %v870_v7, 0  ;;  %v212_v12 = vperm.slane %v868_v6, 2  ;;  %p732_p5 = pnand %p731_p3, %p727_p0 }
  0x22   : > { %v240_v13 = vperm.slane %v870_v7, 2  ;;  %v361_v46 = vperm.slane %v868_v6, 3  ;;  %v360_v48 = vperm.slane %v868_v6, 1  ;;  %v387_v50 = vperm.slane %v870_v7, 3 }
  0x23   : > { %v213_v14 = vperm.slane %v211_v10, 0  ;;  %v224_v15 = vperm.slane %v876_v9, 0  ;;  %v214_v16 = vperm.slane %v212_v12, 0  ;;  %v243_v17 = vperm.slane %v239_v11, 0 }
  0x24   : > { %v225_v18 = vperm.slane %v876_v9, 2  ;;  %v244_v19 = vperm.slane %v240_v13, 0  ;;  %v363_v47 = vperm.slane %v361_v46, 1  ;;  %v373_v49 = vperm.slane %v876_v9, 3 }
  0x25   : > { %v217_v20 = vsub.s32 %v873_v8, %v213_v14  ;;  %v228_v21 = vperm.slane %v224_v15, 0  ;;  %v218_v22 = vsub.s32 %v873_v8, %v214_v16  ;;  %v215_v23 = vsub.s32 %v866_v4, %v213_v14 }
  0x26   : > { %v229_v24 = vperm.slane %v225_v18, 0  ;;  %v216_v25 = vsub.s32 %v866_v4, %v214_v16  ;;  %v367_v51 = vsub.s32 %v873_v8, %v363_v47  ;;  %v365_v52 = vsub.s32 %v866_v4, %v363_v47 }
  0x27   : > { %vm221_vm0 = vcmp.eq.s32.totalorder %v217_v20, 0  ;;  %vm236_vm1 = vcmp.eq.s32.totalorder %v217_v20, 1  ;;  %vm222_vm2 = vcmp.eq.s32.totalorder %v218_v22, 0  ;;  %vm237_vm3 = vcmp.eq.s32.totalorder %v218_v22, 1 }
  0x28   : > { %v232_v26 = vsel %vm221_vm0, %v228_v21, 0.0  ;;  %v247_v27 = vsel %vm236_vm1, %v243_v17, 0.0  ;;  %v233_v28 = vsel %vm222_vm2, %v229_v24, 0.0  ;;  %v248_v29 = vsel %vm237_vm3, %v244_v19, 0.0 }
  0x29   : > { %v251_v30 = vadd.f32 %v247_v27, %v232_v26  ;;  %v252_v31 = vadd.f32 %v248_v29, %v233_v28  ;;  %vm219_vm4 = vcmp.eq.s32.totalorder %v215_v23, 0  ;;  %vm234_vm5 = vcmp.eq.s32.totalorder %v215_v23, 1 }
  0x2a   : > { %v230_v32 = vsel %vm219_vm4, %v228_v21, 0.0  ;;  %v245_v33 = vsel %vm234_vm5, %v243_v17, 0.0  ;;  %vm220_vm6 = vcmp.eq.s32.totalorder %v216_v25, 0  ;;  %vm235_vm7 = vcmp.eq.s32.totalorder %v216_v25, 1 }
  0x2b   : > { %292 = vmatpush.msra.mxu0 %v251_v30  ;;  %647 = vmatpush.msra.mxu2 %v251_v30  ;;  %v249_v34 = vadd.f32 %v245_v33, %v230_v32  ;;  %v231_v35 = vsel %vm220_vm6, %v229_v24, 0.0  ;;  %v246_v36 = vsel %vm235_vm7, %v244_v19, 0.0  ;;  %v362_v53 = vperm.slane %v360_v48, 1 }
  0x2c   : > { %333 = vmatpush.msra.mxu1 %v252_v31  ;;  %649 = vmatpush.msra.mxu3 %v252_v31  ;;  %v250_v37 = vadd.f32 %v246_v36, %v231_v35  ;;  %v377_v55 = vperm.slane %v373_v49, 1  ;;  %v391_v56 = vperm.slane %v387_v50, 1  ;;  %vm371_vm9 = vcmp.eq.s32.totalorder %v367_v51, 0 }
  0x2d   : > { %293 = vmatpush.msra.mxu0 %v249_v34  ;;  %648 = vmatpush.msra.mxu2 %v249_v34  ;;  %vm385_vm10 = vcmp.eq.s32.totalorder %v367_v51, 1  ;;  %vm369_vm11 = vcmp.eq.s32.totalorder %v365_v52, 0  ;;  %vm383_vm12 = vcmp.eq.s32.totalorder %v365_v52, 1  ;;  %v366_v58 = vsub.s32 %v873_v8, %v362_v53 }
  0x2e   : > { %334 = vmatpush.msra.mxu1 %v250_v37  ;;  %650 = vmatpush.msra.mxu3 %v250_v37  ;;  %v372_v59 = vperm.slane %v876_v9, 1  ;;  %v386_v60 = vperm.slane %v870_v7, 1  ;;  %v364_v61 = vsub.s32 %v866_v4, %v362_v53  ;;  %v381_v62 = vsel %vm371_vm9, %v377_v55, 0.0 }
  0x2f   : > { %623 = vmatmul.msk.f32.vlgmr.msra.gmra.mxu0 %vm253_vm8, %v193_v38  ;;  %627 = vmatmul.msk.f32.vlgmr.msra.gmra.mxu2 %vm253_vm8, %v197_v39  ;;  %v395_v63 = vsel %vm385_vm10, %v391_v56, 0.0  ;;  %v379_v0 = vsel %vm369_vm11, %v377_v55, 0.0  ;;  %v393_v1 = vsel %vm383_vm12, %v391_v56, 0.0  ;;  %vm370_vm13 = vcmp.eq.s32.totalorder %v366_v58, 0 }
  0x30   : > { %631 = vmatmul.msk.f32.vlgmr.msra.gmra.mxu1 %vm253_vm8, %v193_v38  ;;  %635 = vmatmul.msk.f32.vlgmr.msra.gmra.mxu3 %vm253_vm8, %v197_v39  ;;  %vm384_vm14 = vcmp.eq.s32.totalorder %v366_v58, 1  ;;  %v376_v2 = vperm.slane %v372_v59, 1  ;;  %v390_v3 = vperm.slane %v386_v60, 1  ;;  %v928_v6 = vadd.f32 %v395_v63, %v381_v62 }
  0x31   : > { %vm368_vm15 = vcmp.eq.s32.totalorder %v364_v61, 0  ;;  %vm382_vm0 = vcmp.eq.s32.totalorder %v364_v61, 1  ;;  %v397_v8 = vadd.f32 %v393_v1, %v379_v0  ;;  %vm484_vm1 = vcmask 1043456  }
  0x32   : > { %v380_v11 = vsel %vm370_vm13, %v376_v2, 0.0  ;;  %v394_v7 = vsel %vm384_vm14, %v390_v3, 0.0  ;;  %v378_v4 = vsel %vm368_vm15, %v376_v2, 0.0  ;;  %v392_v13 = vsel %vm382_vm0, %v390_v3, 0.0 }
  0x33   : > { %v398_v16 = vadd.f32 %v394_v7, %v380_v11  ;;  %v396_v17 = vadd.f32 %v392_v13, %v378_v4  ;;  %vm490_vm2 = vcmask 1041409   ;;  %vm492_vm3 = vcmask 1045509  }
  0x34   : > { %vm495_vm4 = vcmask 1042434   ;;  %vm497_vm5 = vcmask 1046534   ;;  %vm500_vm6 = vcmask 1043459   ;;  %vm502_vm7 = vcmask 1047559  }
  0x37   : > { %624 = vmatmul.msk.f32.gmra.mxu0 %vm253_vm8, %v194_v40  ;;  %628 = vmatmul.msk.f32.gmra.mxu2 %vm253_vm8, %v198_v41 }
  0x38   : > { %632 = vmatmul.msk.f32.gmra.mxu1 %vm253_vm8, %v194_v40  ;;  %636 = vmatmul.msk.f32.gmra.mxu3 %vm253_vm8, %v198_v41 }
  0x3f   : > { %625 = vmatmul.msk.f32.gmra.mxu0 %vm253_vm8, %v195_v42  ;;  %629 = vmatmul.msk.f32.gmra.mxu2 %vm253_vm8, %v199_v43 }
  0x40   : > { %633 = vmatmul.msk.f32.gmra.mxu1 %vm253_vm8, %v195_v42  ;;  %637 = vmatmul.msk.f32.gmra.mxu3 %vm253_vm8, %v199_v43 }
  0x47   : > { %626 = vmatmul.msk.f32.gmra.mxu0 %vm253_vm8, %v196_v44  ;;  %630 = vmatmul.msk.f32.gmra.mxu2 %vm253_vm8, %v200_v45 }
  0x48   : > { %634 = vmatmul.msk.f32.gmra.mxu1 %vm253_vm8, %v196_v44  ;;  %638 = vmatmul.msk.f32.gmra.mxu3 %vm253_vm8, %v200_v45 }
  0xac   : > { %v295_v54 = vpop.f32.mrf.mxu0 }
  0xad   : > { %v336_v57 = vpop.f32.mrf.mxu1  ;;  %v400_v27 = vmul.f32 %v396_v17, %v295_v54 }
  0xae   : > { %v401_v15 = vmul.f32 %v397_v8, %v336_v57 }
  0xb2   : > { %v307_v5 = vpop.f32.mrf.mxu2 }
  0xb3   : > { %v348_v10 = vpop.f32.mrf.mxu3  ;;  %v408_v23 = vmul.f32 %v396_v17, %v307_v5 }
  0xb4   : > { %v298_v9 = vpop.f32.mrf.mxu0  ;;  %v409_v24 = vmul.f32 %v397_v8, %v348_v10 }
  0xb5   : > { %v339_v12 = vpop.f32.mrf.mxu1  ;;  %v402_v20 = vmul.f32 %v398_v16, %v298_v9 }
  0xb6   : > { %v403_v14 = vmul.f32 %v928_v6, %v339_v12 }
  0xb7   : > { %v416_v32 = vadd.f32 %v402_v20, %v400_v27 }
  0xb8   : > { %v423_v18 = vadd.f32 %v403_v14, %v401_v15 }
  0xb9   : > { %v417_v38 = vrot.slane %v416_v32, 4 }
  0xba   : > { %v310_v19 = vpop.f32.mrf.mxu2  ;;  %v424_v28 = vrot.slane %v423_v18, 4 }
  0xbb   : > { %v410_v21 = vmul.f32 %v398_v16, %v310_v19  ;;  %v351_v22 = vpop.f32.mrf.mxu3  ;;  %v418_v49 = vadd.f32 %v417_v38, %v416_v32 }
  0xbc   : > { %v411_v25 = vmul.f32 %v928_v6, %v351_v22  ;;  %v301_v26 = vpop.f32.mrf.mxu0  ;;  %v425_v34 = vadd.f32 %v424_v28, %v423_v18 }
  0xbd   : > { %v342_v29 = vpop.f32.mrf.mxu1  ;;  %v444_v30 = vadd.f32 %v410_v21, %v408_v23  ;;  %v404_v43 = vmul.f32 %v396_v17, %v301_v26  ;;  %v419_v58 = vrot.slane %v418_v49, 2 }
  0xbe   : > { %v451_v31 = vadd.f32 %v411_v25, %v409_v24  ;;  %v426_v42 = vrot.slane %v425_v34, 2  ;;  %v405_v47 = vmul.f32 %v397_v8, %v342_v29 }
  0xbf   : > { %v445_v35 = vrot.slane %v444_v30, 4  ;;  %v420_v12 = vadd.f32 %v419_v58, %v418_v49 }
  0xc0   : > { %v452_v33 = vrot.slane %v451_v31, 4  ;;  %v427_v53 = vadd.f32 %v426_v42, %v425_v34 }
  0xc1   : > { %v446_v46 = vadd.f32 %v445_v35, %v444_v30 }
  0xc2   : > { %v453_v36 = vadd.f32 %v452_v33, %v451_v31  ;;  %v313_v37 = vpop.f32.mrf.mxu2  ;;  %v428_v3 = vrot.slane %v427_v53, 1 }
  0xc3   : > { %v354_v39 = vpop.f32.mrf.mxu3  ;;  %v447_v55 = vrot.slane %v446_v46, 2  ;;  %v412_v59 = vmul.f32 %v396_v17, %v313_v37 }
  0xc4   : > { %v454_v40 = vrot.slane %v453_v36, 2  ;;  %v304_v41 = vpop.f32.mrf.mxu0  ;;  %v413_v0 = vmul.f32 %v397_v8, %v354_v39 }
  0xc5   : > { %v406_v44 = vmul.f32 %v398_v16, %v304_v41  ;;  %v345_v45 = vpop.f32.mrf.mxu1  ;;  %v448_v9 = vadd.f32 %v447_v55, %v446_v46 }
  0xc6   : > { %v407_v48 = vmul.f32 %v928_v6, %v345_v45  ;;  %v455_v51 = vadd.f32 %v454_v40, %v453_v36 }
  0xc7   : > { %v430_v50 = vadd.f32 %v406_v44, %v404_v43  ;;  %v449_v19 = vrot.slane %v448_v9, 1 }
  0xc8   : > { %v437_v52 = vadd.f32 %v407_v48, %v405_v47  ;;  %v456_v63 = vrot.slane %v455_v51, 1 }
  0xc9   : > { %v431_v54 = vrot.slane %v430_v50, 4  ;;  %v450_v28 = vadd.f32 %v449_v19, %v448_v9 }
  0xca   : > { %v438_v56 = vrot.slane %v437_v52, 4  ;;  %v316_v57 = vpop.f32.mrf.mxu2  ;;  %v457_v14 = vadd.f32 %v456_v63, %v455_v51 }
  0xcb   : > { %v432_v60 = vadd.f32 %v431_v54, %v430_v50  ;;  %v414_v61 = vmul.f32 %v398_v16, %v316_v57  ;;  %v357_v62 = vpop.f32.mrf.mxu3  ;;  %v429_v16 = vadd.f32 %v428_v3, %v427_v53 }
  0xcc   : > { %v439_v1 = vadd.f32 %v438_v56, %v437_v52  ;;  %v415_v2 = vmul.f32 %v928_v6, %v357_v62  ;;  %v421_v6 = vrot.slane %v420_v12, 1  ;;  %v482_v23 = vrot.slane %v457_v14, 4 }
  0xcd   : > { %v433_v5 = vrot.slane %v432_v60, 2  ;;  %v458_v10 = vadd.f32 %v414_v61, %v412_v59  ;;  %v480_v26 = vrot.slane %v429_v16, 4 }
  0xce   : > { %v440_v11 = vrot.slane %v439_v1, 2  ;;  %v465_v7 = vadd.f32 %v415_v2, %v413_v0  ;;  %v422_v32 = vadd.f32 %v421_v6, %v420_v12  ;;  %v487_v36 = vsel %vm484_vm1, %v450_v28, %v482_v23 }
  0xcf   : > { %v434_v4 = vadd.f32 %v433_v5, %v432_v60  ;;  %v459_v13 = vrot.slane %v458_v10, 4  ;;  %v494_v41 = vrot.slane %v487_v36, 6 }
  0xd0   : > { %v441_v15 = vadd.f32 %v440_v11, %v439_v1  ;;  %v466_v17 = vrot.slane %v465_v7, 4  ;;  %v485_v39 = vsel %vm484_vm1, %v422_v32, %v480_v26 }
  0xd1   : > { %v460_v18 = vadd.f32 %v459_v13, %v458_v10  ;;  %v435_v8 = vrot.slane %v434_v4, 1 }
  0xd2   : > { %v442_v20 = vrot.slane %v441_v15, 1  ;;  %v467_v21 = vadd.f32 %v466_v17, %v465_v7 }
  0xd3   : > { %v461_v22 = vrot.slane %v460_v18, 2  ;;  %v436_v29 = vadd.f32 %v435_v8, %v434_v4 }
  0xd4   : > { %v443_v24 = vadd.f32 %v442_v20, %v441_v15  ;;  %v468_v25 = vrot.slane %v467_v21, 2 }
  0xd5   : > { %v462_v27 = vadd.f32 %v461_v22, %v460_v18 }
  0xd6   : > { %v481_v30 = vrot.slane %v443_v24, 4  ;;  %v469_v31 = vadd.f32 %v468_v25, %v467_v21 }
  0xd7   : > { %v463_v33 = vrot.slane %v462_v27, 1 }
  0xd8   : > { %v470_v34 = vrot.slane %v469_v31, 1  ;;  %v486_v35 = vsel %vm484_vm1, %v436_v29, %v481_v30 }
  0xd9   : > { %v489_v37 = vrot.slane %v486_v35, 7  ;;  %v464_v42 = vadd.f32 %v463_v33, %v462_v27 }
  0xda   : > { %v471_v38 = vadd.f32 %v470_v34, %v469_v31 }
  0xdb   : > { %v491_v40 = vsel %vm490_vm2, %v489_v37, %v485_v39 }
  0xdc   : > { %v483_v43 = vrot.slane %v471_v38, 4  ;;  %v493_v44 = vsel %vm492_vm3, %v489_v37, %v491_v40 }
  0xdd   : > { %v496_v45 = vsel %vm495_vm4, %v494_v41, %v493_v44 }
  0xde   : > { %v488_v46 = vsel %vm484_vm1, %v464_v42, %v483_v43  ;;  %v498_v48 = vsel %vm497_vm5, %v494_v41, %v496_v45 }
  0xdf   : > { %v499_v47 = vrot.slane %v488_v46, 5 }
  0xe1   : > { %v501_v49 = vsel %vm500_vm6, %v499_v47, %v498_v48 }
  0xe2   : > { %v503_v50 = vsel %vm502_vm7, %v499_v47, %v501_v49 }
  0xe3   : > { %505 = vst [vmem:[%s176_s12] sm:$0xff] %v503_v50 }
  0xe4   : > { %735 = shalt.err (!%p732_p5)
}
  0xe5   : > { %653 = dma.vmem_to_hbm [thread:$0]  (%p843_p4), %s523_s16, 128, %s525_s18, %s507_s20  }
  0xe6 PF: > { %p659_p6 = scmp.ge.s32.totalorder %s786_s14, 2  ;;  %s536_s30 = sand.u32 1, %s766_s9  }
  0xe7   : > { %s537_s3 = scalar_lea.sflag [#allocation3], %s536_s30 }
  0xe8   : > { %p656_p7 = pnand %p659_p6, %p850_p8 }
  0xea   : > { %p657_p9 = pneg %p656_p7 }
  0xec   : > { %761 = dma.done.wait (%p657_p9), %s537_s3, 128  }
  0xed   : > { %763 = vsyncadd (%p657_p9), %s537_s3, 4294967168  ;;  %s15_s14 = sadd.s32 1, %s786_s14   ;;  %s987_s9 = smov %s770_s10 }
  0xee   : > { %p12_p10 = scmp.ge.s32.totalorder %s15_s14, 4   ;;  %s988_s10 = smov %s774_s11 }
  0xef   : > { %s989_s11 = smov %s856_s22  ;;  %s990_s12 = smov %s782_s13 }
  0xf0   : > { %s991_s13 = smov %s993_s17  ;;  %14 = sbr.rel (!%p12_p10) target bundleno = 4 (0x4), region = 66 }
  0xf5   :  { %543 = vsyncpa [#allocation3], 1 }
  0xf6   :  { %545 = vsyncpa [#allocation3 + $0x1], 1 }

</bundles_post_ra>
